<compile_context>
chip_gen: v5e
topology: v5e:2x2
jax: 0.10.0
libtpu: 0.0.40
codegen_flags: <defaults>
</compile_context>

<pallas_src>
import jax
import jax.numpy as jnp
import numpy as np
from jax import lax
from jax.experimental import pallas as pl
from jax.experimental.pallas import tpu as pltpu


def rnn_kernel(xproj_ref, h0_ref, whT_ref, woutT_ref, bout_ref, res_ref, y_ref):
    """Recurrence + output head, feature-major (latent, batch).

    h <- tanh(xproj[t] + W_h^T @ h);   res[t] = state BEFORE step t;
    y = W_out^T @ res[-1] + b_out.
    """
    length = res_ref.shape[0]
    whT = whT_ref[...]                       # (latent, latent), stays resident

    def step(t, h):
        res_ref[t] = h                       # state BEFORE step t (matches the PyTorch loop)
        return jnp.tanh(
            xproj_ref[t]
            + jnp.dot(whT, h, preferred_element_type=jnp.float32))

    # Only length-1 updates are observable (the final PyTorch tanh update is dead code
    # w.r.t. the returned (res, y)), so stop one step early and reuse the last state.
    # Fully unrolled straight-line recurrence: length is small and static, so the
    # scheduler can overlap the res store of step t with the matmul of step t+1.
    h_last = lax.fori_loop(0, length - 1, step, h0_ref[...], unroll=True)
    res_ref[length - 1] = h_last
    y_ref[...] = (
        jnp.dot(woutT_ref[...], h_last, preferred_element_type=jnp.float32)
        + bout_ref[...])


def rnn_forward(x, h, params):
    win, bin_, wh, bh, wout, bout = params
    length, batch, dim = x.shape
    latent = h.shape[-1]
    dimout = wout.shape[-1]

    # Input projection for every timestep, off the serial path, both biases folded in,
    # produced directly feature-major: (length, latent, batch).
    xproj_fm = (jnp.einsum('tbd,do->tob', x, win)
                + (bin_ + bh).reshape(latent, 1))

    vmem = pl.BlockSpec(memory_space=pltpu.MemorySpace.VMEM)
    res_fm, y_fm = pl.pallas_call(
        rnn_kernel,
        out_shape=(jax.ShapeDtypeStruct((length, latent, batch), jnp.float32),
                   jax.ShapeDtypeStruct((dimout, batch), jnp.float32)),
        in_specs=[vmem, vmem, vmem, vmem, vmem],
        out_specs=(vmem, vmem),
    )(xproj_fm, h.T, wh.T, wout.T, bout.reshape(dimout, 1))

    res = jnp.transpose(res_fm, (0, 2, 1))           # back to (length, batch, latent)
    y = y_fm.T                                        # (batch, dimout)
    return res, y


rnn_forward_jit = jax.jit(rnn_forward)


def rnn_ref(x, h, params):
    """Pure-JAX reference mirroring the PyTorch forward."""
    win, bin_, wh, bh, wout, bout = params
    res = []
    for t in range(x.shape[0]):
        res.append(h)
        h = jnp.tanh(x[t] @ win + bin_ + h @ wh + bh)
    res = jnp.stack(res)
    y = res[-1] @ wout + bout
    return res, y


def make_linear_params(key, fan_in, fan_out):
    """Deterministic PyTorch-style Linear init: U(-1/sqrt(fan_in), 1/sqrt(fan_in))."""
    kw, kb = jax.random.split(key)
    bound = 1.0 / np.sqrt(fan_in)
    w = jax.random.uniform(kw, (fan_out, fan_in), jnp.float32, -bound, bound)
    b = jax.random.uniform(kb, (fan_out,), jnp.float32, -bound, bound)
    return w.T, b.reshape(1, fan_out)        # pass as (in, out) and (1, out)


if __name__ == "__main__":
    # Shapes implied by the module: x.view(100, 1) forces batch=100, dim=1.
    length, batch, dim, latent, dimout = 8, 100, 1, 32, 8

    key = jax.random.PRNGKey(0)
    k_x, k_h, k_lin, k_hid, k_out = jax.random.split(key, 5)

    x = jax.random.normal(k_x, (length, batch, dim), jnp.float32)
    h = jax.random.normal(k_h, (batch, latent), jnp.float32)

    win, bin_ = make_linear_params(k_lin, dim, latent)       # self.linear
    wh, bh = make_linear_params(k_hid, latent, latent)       # self.hidden
    wout, bout = make_linear_params(k_out, latent, dimout)   # self.hidden_out
    params = (win, bin_, wh, bh, wout, bout)

    res, y = rnn_forward_jit(x, h, params)
    jax.block_until_ready((res, y))

    res_exp, y_exp = rnn_ref(x, h, params)
    np.testing.assert_allclose(np.asarray(res), np.asarray(res_exp), rtol=1e-5, atol=1e-5)
    np.testing.assert_allclose(np.asarray(y), np.asarray(y_exp), rtol=1e-5, atol=1e-5)

    print("KERNEL_OK")
</pallas_src>

<mosaic_0001>
module attributes {stable_mosaic.version = 11 : i64} {
  func.func @rnn_kernel(%arg0: memref<8x32x100xf32, #tpu.memory_space<vmem>>, %arg1: memref<32x100xf32, #tpu.memory_space<vmem>>, %arg2: memref<32x32xf32, #tpu.memory_space<vmem>>, %arg3: memref<8x32xf32, #tpu.memory_space<vmem>>, %arg4: memref<8x1xf32, #tpu.memory_space<vmem>>, %arg5: memref<8x32x100xf32, #tpu.memory_space<vmem>>, %arg6: memref<8x100xf32, #tpu.memory_space<vmem>>) attributes {dimension_semantics = [], scalar_prefetch = 0 : i64, scratch_operands = 0 : i64, tpu.core_type = #tpu.core_type<tc>} {
    %c0 = arith.constant 0 : index
    %c0_0 = arith.constant 0 : index
    %0 = vector.load %arg2[%c0, %c0_0] : memref<32x32xf32, #tpu.memory_space<vmem>>, vector<32x32xf32>
    %c0_1 = arith.constant 0 : index
    %c0_2 = arith.constant 0 : index
    %1 = vector.load %arg1[%c0_1, %c0_2] : memref<32x100xf32, #tpu.memory_space<vmem>>, vector<32x100xf32>
    %c0_i32 = arith.constant 0 : i32
    %2 = arith.index_cast %c0_i32 : i32 to index
    %c0_3 = arith.constant 0 : index
    %c0_4 = arith.constant 0 : index
    %3 = vector.load %arg5[%2, %c0_3, %c0_4] : memref<8x32x100xf32, #tpu.memory_space<vmem>>, vector<1x32x100xf32>
    %4 = vector.shape_cast %3 : vector<1x32x100xf32> to vector<32x100xf32>
    %5 = vector.shape_cast %1 : vector<32x100xf32> to vector<1x32x100xf32>
    tpu.vector_store %arg5[%2, %c0_3, %c0_4], %5 {strides = array<i32>} : memref<8x32x100xf32, #tpu.memory_space<vmem>>, vector<1x32x100xf32>,
    %6 = arith.index_cast %c0_i32 : i32 to index
    %c0_5 = arith.constant 0 : index
    %c0_6 = arith.constant 0 : index
    %7 = vector.load %arg0[%6, %c0_5, %c0_6] : memref<8x32x100xf32, #tpu.memory_space<vmem>>, vector<1x32x100xf32>
    %8 = vector.shape_cast %7 : vector<1x32x100xf32> to vector<32x100xf32>
    %cst = arith.constant dense<0.000000e+00> : vector<32x100xf32>
    %9 = tpu.matmul %0, %1, %cst {dimension_numbers = #tpu.dot_dimension_numbers<[1], [0], [0], [1], [0, 0, 1, 1], [], []>} : vector<32x32xf32>, vector<32x100xf32>, vector<32x100xf32> -> vector<32x100xf32>
    %10 = arith.addf %8, %9 : vector<32x100xf32>
    %11 = math.tanh %10 : vector<32x100xf32>
    %c1_i32 = arith.constant 1 : i32
    %12 = arith.index_cast %c1_i32 : i32 to index
    %c0_7 = arith.constant 0 : index
    %c0_8 = arith.constant 0 : index
    %13 = vector.load %arg5[%12, %c0_7, %c0_8] : memref<8x32x100xf32, #tpu.memory_space<vmem>>, vector<1x32x100xf32>
    %14 = vector.shape_cast %13 : vector<1x32x100xf32> to vector<32x100xf32>
    %15 = vector.shape_cast %11 : vector<32x100xf32> to vector<1x32x100xf32>
    tpu.vector_store %arg5[%12, %c0_7, %c0_8], %15 {strides = array<i32>} : memref<8x32x100xf32, #tpu.memory_space<vmem>>, vector<1x32x100xf32>,
    %16 = arith.index_cast %c1_i32 : i32 to index
    %c0_9 = arith.constant 0 : index
    %c0_10 = arith.constant 0 : index
    %17 = vector.load %arg0[%16, %c0_9, %c0_10] : memref<8x32x100xf32, #tpu.memory_space<vmem>>, vector<1x32x100xf32>
    %18 = vector.shape_cast %17 : vector<1x32x100xf32> to vector<32x100xf32>
    %cst_11 = arith.constant dense<0.000000e+00> : vector<32x100xf32>
    %19 = tpu.matmul %0, %11, %cst_11 {dimension_numbers = #tpu.dot_dimension_numbers<[1], [0], [0], [1], [0, 0, 1, 1], [], []>} : vector<32x32xf32>, vector<32x100xf32>, vector<32x100xf32> -> vector<32x100xf32>
    %20 = arith.addf %18, %19 : vector<32x100xf32>
    %21 = math.tanh %20 : vector<32x100xf32>
    %c2_i32 = arith.constant 2 : i32
    %22 = arith.index_cast %c2_i32 : i32 to index
    %c0_12 = arith.constant 0 : index
    %c0_13 = arith.constant 0 : index
    %23 = vector.load %arg5[%22, %c0_12, %c0_13] : memref<8x32x100xf32, #tpu.memory_space<vmem>>, vector<1x32x100xf32>
    %24 = vector.shape_cast %23 : vector<1x32x100xf32> to vector<32x100xf32>
    %25 = vector.shape_cast %21 : vector<32x100xf32> to vector<1x32x100xf32>
    tpu.vector_store %arg5[%22, %c0_12, %c0_13], %25 {strides = array<i32>} : memref<8x32x100xf32, #tpu.memory_space<vmem>>, vector<1x32x100xf32>,
    %26 = arith.index_cast %c2_i32 : i32 to index
    %c0_14 = arith.constant 0 : index
    %c0_15 = arith.constant 0 : index
    %27 = vector.load %arg0[%26, %c0_14, %c0_15] : memref<8x32x100xf32, #tpu.memory_space<vmem>>, vector<1x32x100xf32>
    %28 = vector.shape_cast %27 : vector<1x32x100xf32> to vector<32x100xf32>
    %cst_16 = arith.constant dense<0.000000e+00> : vector<32x100xf32>
    %29 = tpu.matmul %0, %21, %cst_16 {dimension_numbers = #tpu.dot_dimension_numbers<[1], [0], [0], [1], [0, 0, 1, 1], [], []>} : vector<32x32xf32>, vector<32x100xf32>, vector<32x100xf32> -> vector<32x100xf32>
    %30 = arith.addf %28, %29 : vector<32x100xf32>
    %31 = math.tanh %30 : vector<32x100xf32>
    %c3_i32 = arith.constant 3 : i32
    %32 = arith.index_cast %c3_i32 : i32 to index
    %c0_17 = arith.constant 0 : index
    %c0_18 = arith.constant 0 : index
    %33 = vector.load %arg5[%32, %c0_17, %c0_18] : memref<8x32x100xf32, #tpu.memory_space<vmem>>, vector<1x32x100xf32>
    %34 = vector.shape_cast %33 : vector<1x32x100xf32> to vector<32x100xf32>
    %35 = vector.shape_cast %31 : vector<32x100xf32> to vector<1x32x100xf32>
    tpu.vector_store %arg5[%32, %c0_17, %c0_18], %35 {strides = array<i32>} : memref<8x32x100xf32, #tpu.memory_space<vmem>>, vector<1x32x100xf32>,
    %36 = arith.index_cast %c3_i32 : i32 to index
    %c0_19 = arith.constant 0 : index
    %c0_20 = arith.constant 0 : index
    %37 = vector.load %arg0[%36, %c0_19, %c0_20] : memref<8x32x100xf32, #tpu.memory_space<vmem>>, vector<1x32x100xf32>
    %38 = vector.shape_cast %37 : vector<1x32x100xf32> to vector<32x100xf32>
    %cst_21 = arith.constant dense<0.000000e+00> : vector<32x100xf32>
    %39 = tpu.matmul %0, %31, %cst_21 {dimension_numbers = #tpu.dot_dimension_numbers<[1], [0], [0], [1], [0, 0, 1, 1], [], []>} : vector<32x32xf32>, vector<32x100xf32>, vector<32x100xf32> -> vector<32x100xf32>
    %40 = arith.addf %38, %39 : vector<32x100xf32>
    %41 = math.tanh %40 : vector<32x100xf32>
    %c4_i32 = arith.constant 4 : i32
    %42 = arith.index_cast %c4_i32 : i32 to index
    %c0_22 = arith.constant 0 : index
    %c0_23 = arith.constant 0 : index
    %43 = vector.load %arg5[%42, %c0_22, %c0_23] : memref<8x32x100xf32, #tpu.memory_space<vmem>>, vector<1x32x100xf32>
    %44 = vector.shape_cast %43 : vector<1x32x100xf32> to vector<32x100xf32>
    %45 = vector.shape_cast %41 : vector<32x100xf32> to vector<1x32x100xf32>
    tpu.vector_store %arg5[%42, %c0_22, %c0_23], %45 {strides = array<i32>} : memref<8x32x100xf32, #tpu.memory_space<vmem>>, vector<1x32x100xf32>,
    %46 = arith.index_cast %c4_i32 : i32 to index
    %c0_24 = arith.constant 0 : index
    %c0_25 = arith.constant 0 : index
    %47 = vector.load %arg0[%46, %c0_24, %c0_25] : memref<8x32x100xf32, #tpu.memory_space<vmem>>, vector<1x32x100xf32>
    %48 = vector.shape_cast %47 : vector<1x32x100xf32> to vector<32x100xf32>
    %cst_26 = arith.constant dense<0.000000e+00> : vector<32x100xf32>
    %49 = tpu.matmul %0, %41, %cst_26 {dimension_numbers = #tpu.dot_dimension_numbers<[1], [0], [0], [1], [0, 0, 1, 1], [], []>} : vector<32x32xf32>, vector<32x100xf32>, vector<32x100xf32> -> vector<32x100xf32>
    %50 = arith.addf %48, %49 : vector<32x100xf32>
    %51 = math.tanh %50 : vector<32x100xf32>
    %c5_i32 = arith.constant 5 : i32
    %52 = arith.index_cast %c5_i32 : i32 to index
    %c0_27 = arith.constant 0 : index
    %c0_28 = arith.constant 0 : index
    %53 = vector.load %arg5[%52, %c0_27, %c0_28] : memref<8x32x100xf32, #tpu.memory_space<vmem>>, vector<1x32x100xf32>
    %54 = vector.shape_cast %53 : vector<1x32x100xf32> to vector<32x100xf32>
    %55 = vector.shape_cast %51 : vector<32x100xf32> to vector<1x32x100xf32>
    tpu.vector_store %arg5[%52, %c0_27, %c0_28], %55 {strides = array<i32>} : memref<8x32x100xf32, #tpu.memory_space<vmem>>, vector<1x32x100xf32>,
    %56 = arith.index_cast %c5_i32 : i32 to index
    %c0_29 = arith.constant 0 : index
    %c0_30 = arith.constant 0 : index
    %57 = vector.load %arg0[%56, %c0_29, %c0_30] : memref<8x32x100xf32, #tpu.memory_space<vmem>>, vector<1x32x100xf32>
    %58 = vector.shape_cast %57 : vector<1x32x100xf32> to vector<32x100xf32>
    %cst_31 = arith.constant dense<0.000000e+00> : vector<32x100xf32>
    %59 = tpu.matmul %0, %51, %cst_31 {dimension_numbers = #tpu.dot_dimension_numbers<[1], [0], [0], [1], [0, 0, 1, 1], [], []>} : vector<32x32xf32>, vector<32x100xf32>, vector<32x100xf32> -> vector<32x100xf32>
    %60 = arith.addf %58, %59 : vector<32x100xf32>
    %61 = math.tanh %60 : vector<32x100xf32>
    %c6_i32 = arith.constant 6 : i32
    %62 = arith.index_cast %c6_i32 : i32 to index
    %c0_32 = arith.constant 0 : index
    %c0_33 = arith.constant 0 : index
    %63 = vector.load %arg5[%62, %c0_32, %c0_33] : memref<8x32x100xf32, #tpu.memory_space<vmem>>, vector<1x32x100xf32>
    %64 = vector.shape_cast %63 : vector<1x32x100xf32> to vector<32x100xf32>
    %65 = vector.shape_cast %61 : vector<32x100xf32> to vector<1x32x100xf32>
    tpu.vector_store %arg5[%62, %c0_32, %c0_33], %65 {strides = array<i32>} : memref<8x32x100xf32, #tpu.memory_space<vmem>>, vector<1x32x100xf32>,
    %66 = arith.index_cast %c6_i32 : i32 to index
    %c0_34 = arith.constant 0 : index
    %c0_35 = arith.constant 0 : index
    %67 = vector.load %arg0[%66, %c0_34, %c0_35] : memref<8x32x100xf32, #tpu.memory_space<vmem>>, vector<1x32x100xf32>
    %68 = vector.shape_cast %67 : vector<1x32x100xf32> to vector<32x100xf32>
    %cst_36 = arith.constant dense<0.000000e+00> : vector<32x100xf32>
    %69 = tpu.matmul %0, %61, %cst_36 {dimension_numbers = #tpu.dot_dimension_numbers<[1], [0], [0], [1], [0, 0, 1, 1], [], []>} : vector<32x32xf32>, vector<32x100xf32>, vector<32x100xf32> -> vector<32x100xf32>
    %70 = arith.addf %68, %69 : vector<32x100xf32>
    %71 = math.tanh %70 : vector<32x100xf32>
    %c7_i32 = arith.constant 7 : i32
    %c7 = arith.constant 7 : index
    %c0_37 = arith.constant 0 : index
    %c0_38 = arith.constant 0 : index
    %72 = vector.load %arg5[%c7, %c0_37, %c0_38] : memref<8x32x100xf32, #tpu.memory_space<vmem>>, vector<1x32x100xf32>
    %73 = vector.shape_cast %72 : vector<1x32x100xf32> to vector<32x100xf32>
    %74 = vector.shape_cast %71 : vector<32x100xf32> to vector<1x32x100xf32>
    tpu.vector_store %arg5[%c7, %c0_37, %c0_38], %74 {strides = array<i32>} : memref<8x32x100xf32, #tpu.memory_space<vmem>>, vector<1x32x100xf32>,
    %c0_39 = arith.constant 0 : index
    %c0_40 = arith.constant 0 : index
    %75 = vector.load %arg3[%c0_39, %c0_40] : memref<8x32xf32, #tpu.memory_space<vmem>>, vector<8x32xf32>
    %cst_41 = arith.constant dense<0.000000e+00> : vector<8x100xf32>
    %76 = tpu.matmul %75, %71, %cst_41 {dimension_numbers = #tpu.dot_dimension_numbers<[1], [0], [0], [1], [0, 0, 1, 1], [], []>} : vector<8x32xf32>, vector<32x100xf32>, vector<8x100xf32> -> vector<8x100xf32>
    %c0_42 = arith.constant 0 : index
    %c0_43 = arith.constant 0 : index
    %77 = vector.load %arg4[%c0_42, %c0_43] : memref<8x1xf32, #tpu.memory_space<vmem>>, vector<8x1xf32>
    %78 = vector.broadcast %77 : vector<8x1xf32> to vector<8x100xf32>
    %79 = arith.addf %76, %78 : vector<8x100xf32>
    %c0_44 = arith.constant 0 : index
    %c0_45 = arith.constant 0 : index
    %80 = vector.load %arg6[%c0_44, %c0_45] : memref<8x100xf32, #tpu.memory_space<vmem>>, vector<8x100xf32>
    tpu.vector_store %arg6[%c0_44, %c0_45], %79 {strides = array<i32>} : memref<8x100xf32, #tpu.memory_space<vmem>>, vector<8x100xf32>,
    return
  }
}

</mosaic_0001>

<bundles_post_ra>
// kernel: rnn_forward.1
= control target key start
LH: loop header
LB: loop body
LE: loop exit
PB: predicated region body
PF: predicated region fallthrough
CT: control target
= control target key end

     0   :  { %12 = vsyncpa [#allocation3], 0  ;;  %vm32_vm0 = vcmask 818176   ;;  %s868_s0 = inlined_call_operand.vmem [shape: f32[8,32,100], index: 0, kind: input, shape index: {}]   ;;  %s869_s1 = inlined_call_operand.vmem [shape: f32[32,100], index: 1, kind: input, shape index: {}]   ;;  %s870_s2 = inlined_call_operand.vmem [shape: f32[32,32], index: 2, kind: input, shape index: {}]   ;;  %s871_s3 = inlined_call_operand.vmem [shape: f32[8,32], index: 3, kind: input, shape index: {}]   ;;  %s872_s4 = inlined_call_operand.vmem [shape: f32[8,1], index: 4, kind: input, shape index: {}]   ;;  %s873_s5 = inlined_call_operand.hbm [shape: f32[8,32,100], index: 5, kind: output, shape index: {0}]   ;;  %s874_s6 = inlined_call_operand.hbm [shape: f32[8,100], index: 6, kind: output, shape index: {1}]  }
   0x1   :  { %v31_v0 = vld [vmem:[%s869_s1 + $0x18] sm:$0xff]  ;;  %v30_v1 = vld [vmem:[%s869_s1 + $0x10] sm:$0xff]  ;;  %v29_v2 = vld [vmem:[%s869_s1 + $0x8] sm:$0xff] }
   0x2   :  { %36 = vst.msk [vmem:[#allocation2 + $0x18] sm:$0xff] %vm32_vm0, %v31_v0  ;;  %66 = vmatpush.msra.mxu0 %v31_v0  ;;  %v28_v3 = vld [vmem:[%s869_s1] sm:$0xff] }
   0x3   :  { %35 = vst.msk [vmem:[#allocation2 + $0x10] sm:$0xff] %vm32_vm0, %v30_v1 }
   0x4   :  { %67 = vmatpush.msra.mxu0 %v30_v1  ;;  %34 = vst.msk [vmem:[#allocation2 + $0x8] sm:$0xff] %vm32_vm0, %v29_v2 }
   0x5   :  { %13 = vsyncpa [#allocation5], 0  ;;  %33 = vst.msk [vmem:[#allocation2] sm:$0xff] %vm32_vm0, %v28_v3  ;;  %v669_v4 = vld [vmem:[%s870_s2] sm:$0xff]  ;;  %vm41_vm1 = vcmask 261120   ;;  %v676_v5 = vld [vmem:[%s870_s2 + $0x8] sm:$0xff] }
   0x6   :  { %68 = vmatpush.msra.mxu0 %v29_v2  ;;  %v683_v6 = vld [vmem:[%s870_s2 + $0x10] sm:$0xff]  ;;  %v690_v7 = vld [vmem:[%s870_s2 + $0x18] sm:$0xff]  ;;  %v37_v8 = vld [vmem:[%s868_s0] sm:$0xff]  ;;  %s415_s21 = sshll.u32 %s873_s5, 4  ;;  %s612_s22 = smov 128   ;;  %s416_s21 = int_to_ptr.hbm [resolvable:$true] %s415_s21 }
   0x7   :  { %v38_v11 = vld [vmem:[%s868_s0 + $0x8] sm:$0xff]  ;;  %v39_v15 = vld [vmem:[%s868_s0 + $0x10] sm:$0xff]  ;;  %v40_v19 = vld [vmem:[%s868_s0 + $0x18] sm:$0xff]  ;;  %s613_s23 = smov 8   ;;  %s614_s24 = smov [#allocation4]  }
   0x8   :  { %69 = vmatpush.msra.mxu0 %v28_v3  ;;  %v447_v24 = vld [vmem:[%s868_s0 + $0x20] sm:$0xff]  ;;  %v448_v27 = vld [vmem:[%s868_s0 + $0x28] sm:$0xff]  ;;  %v449_v31 = vld [vmem:[%s868_s0 + $0x30] sm:$0xff]  ;;  %s427_s25 = sshll.u32 %s614_s24, 4  ;;  %s428_s25 = int_to_ptr.vmem [resolvable:$true] %s427_s25 }
   0x9   :  { %443 = vmatmul.msk.f32.vlgmr.msra.gmra.mxu0 %vm41_vm1, %v669_v4  ;;  %v450_v35 = vld [vmem:[%s868_s0 + $0x38] sm:$0xff]  ;;  %v455_v40 = vld [vmem:[%s868_s0 + $0x40] sm:$0xff]  ;;  %v456_v43 = vld [vmem:[%s868_s0 + $0x48] sm:$0xff] }
   0xa   :  { %v457_v47 = vld [vmem:[%s868_s0 + $0x50] sm:$0xff]  ;;  %v458_v51 = vld [vmem:[%s868_s0 + $0x58] sm:$0xff]  ;;  %v463_v56 = vld [vmem:[%s868_s0 + $0x60] sm:$0xff] }
   0xb   :  { %v464_v59 = vld [vmem:[%s868_s0 + $0x68] sm:$0xff]  ;;  %v465_v63 = vld [vmem:[%s868_s0 + $0x70] sm:$0xff]  ;;  %v466_v3 = vld [vmem:[%s868_s0 + $0x78] sm:$0xff] }
  0x11   :  { %444 = vmatmul.msk.f32.gmra.mxu0 %vm41_vm1, %v676_v5 }
  0x19   :  { %445 = vmatmul.msk.f32.gmra.mxu0 %vm41_vm1, %v683_v6 }
  0x21   :  { %446 = vmatmul.msk.f32.gmra.mxu0 %vm41_vm1, %v690_v7 }
  0x86   :  { %v71_v9 = vpop.f32.mrf.mxu0 }
  0x87   :  { %v83_v10 = vadd.f32 %v71_v9, %v37_v8 }
  0x89   :  { %502 = vtanh.f32 %v83_v10 }
  0x8e   :  { %v74_v12 = vpop.f32.mrf.mxu0 }
  0x8f   :  { %v503_v13 = vpop.eup %502  ;;  %v84_v14 = vadd.f32 %v74_v12, %v38_v11  ;;  %v471_v12 = vld [vmem:[%s868_s0 + $0x80] sm:$0xff] }
  0x90   :  { %92 = vst.msk [vmem:[#allocation2 + $0x20] sm:$0xff] %vm32_vm0, %v503_v13 }
  0x91   :  { %504 = vtanh.f32 %v84_v14 }
  0x96   :  { %v77_v16 = vpop.f32.mrf.mxu0 }
  0x97   :  { %v505_v17 = vpop.eup %504  ;;  %v85_v18 = vadd.f32 %v77_v16, %v39_v15  ;;  %v472_v15 = vld [vmem:[%s868_s0 + $0x88] sm:$0xff] }
  0x98   :  { %93 = vst.msk [vmem:[#allocation2 + $0x28] sm:$0xff] %vm32_vm0, %v505_v17 }
  0x99   :  { %506 = vtanh.f32 %v85_v18 }
  0x9e   :  { %v80_v20 = vpop.f32.mrf.mxu0 }
  0x9f   :  { %v507_v21 = vpop.eup %506  ;;  %v86_v22 = vadd.f32 %v80_v20, %v40_v19  ;;  %v473_v19 = vld [vmem:[%s868_s0 + $0x90] sm:$0xff] }
  0xa0   :  { %94 = vst.msk [vmem:[#allocation2 + $0x30] sm:$0xff] %vm32_vm0, %v507_v21 }
  0xa1   :  { %508 = vtanh.f32 %v86_v22 }
  0xa7   :  { %v509_v23 = vpop.eup %508 }
  0xa8   :  { %95 = vst.msk [vmem:[#allocation2 + $0x38] sm:$0xff] %vm32_vm0, %v509_v23  ;;  %113 = vmatpush.msra.mxu1 %v509_v23  ;;  %v474_v23 = vld [vmem:[%s868_s0 + $0x98] sm:$0xff] }
  0xaa   :  { %114 = vmatpush.msra.mxu1 %v507_v21 }
  0xac   :  { %115 = vmatpush.msra.mxu1 %v505_v17 }
  0xae   :  { %116 = vmatpush.msra.mxu1 %v503_v13 }
  0xaf   :  { %451 = vmatmul.msk.f32.vlgmr.msra.gmra.mxu1 %vm41_vm1, %v669_v4 }
  0xb7   :  { %452 = vmatmul.msk.f32.gmra.mxu1 %vm41_vm1, %v676_v5 }
  0xbf   :  { %453 = vmatmul.msk.f32.gmra.mxu1 %vm41_vm1, %v683_v6 }
  0xc7   :  { %454 = vmatmul.msk.f32.gmra.mxu1 %vm41_vm1, %v690_v7 }
 0x12c   :  { %v118_v25 = vpop.f32.mrf.mxu1 }
 0x12d   :  { %v130_v26 = vadd.f32 %v447_v24, %v118_v25 }
 0x12f   :  { %510 = vtanh.f32 %v130_v26 }
 0x134   :  { %v121_v28 = vpop.f32.mrf.mxu1 }
 0x135   :  { %v511_v29 = vpop.eup %510  ;;  %v131_v30 = vadd.f32 %v448_v27, %v121_v28  ;;  %v479_v28 = vld [vmem:[%s868_s0 + $0xa0] sm:$0xff] }
 0x136   :  { %139 = vst.msk [vmem:[#allocation2 + $0x40] sm:$0xff] %vm32_vm0, %v511_v29 }
 0x137   :  { %512 = vtanh.f32 %v131_v30 }
 0x13c   :  { %v124_v32 = vpop.f32.mrf.mxu1 }
 0x13d   :  { %v513_v33 = vpop.eup %512  ;;  %v132_v34 = vadd.f32 %v449_v31, %v124_v32  ;;  %v480_v31 = vld [vmem:[%s868_s0 + $0xa8] sm:$0xff] }
 0x13e   :  { %140 = vst.msk [vmem:[#allocation2 + $0x48] sm:$0xff] %vm32_vm0, %v513_v33 }
 0x13f   :  { %514 = vtanh.f32 %v132_v34 }
 0x144   :  { %v127_v36 = vpop.f32.mrf.mxu1 }
 0x145   :  { %v515_v37 = vpop.eup %514  ;;  %v133_v38 = vadd.f32 %v450_v35, %v127_v36  ;;  %v481_v35 = vld [vmem:[%s868_s0 + $0xb0] sm:$0xff] }
 0x146   :  { %141 = vst.msk [vmem:[#allocation2 + $0x50] sm:$0xff] %vm32_vm0, %v515_v37 }
 0x147   :  { %516 = vtanh.f32 %v133_v38 }
 0x14d   :  { %v517_v39 = vpop.eup %516 }
 0x14e   :  { %142 = vst.msk [vmem:[#allocation2 + $0x58] sm:$0xff] %vm32_vm0, %v517_v39  ;;  %160 = vmatpush.msra.mxu2 %v517_v39  ;;  %v482_v39 = vld [vmem:[%s868_s0 + $0xb8] sm:$0xff] }
 0x150   :  { %161 = vmatpush.msra.mxu2 %v515_v37 }
 0x152   :  { %162 = vmatpush.msra.mxu2 %v513_v33 }
 0x154   :  { %163 = vmatpush.msra.mxu2 %v511_v29 }
 0x155   :  { %459 = vmatmul.msk.f32.vlgmr.msra.gmra.mxu2 %vm41_vm1, %v669_v4 }
 0x15d   :  { %460 = vmatmul.msk.f32.gmra.mxu2 %vm41_vm1, %v676_v5 }
 0x165   :  { %461 = vmatmul.msk.f32.gmra.mxu2 %vm41_vm1, %v683_v6 }
 0x16d   :  { %462 = vmatmul.msk.f32.gmra.mxu2 %vm41_vm1, %v690_v7 }
 0x1d8   :  { %v165_v41 = vpop.f32.mrf.mxu2 }
 0x1d9   :  { %v177_v42 = vadd.f32 %v455_v40, %v165_v41 }
 0x1db   :  { %518 = vtanh.f32 %v177_v42 }
 0x1e0   :  { %v168_v44 = vpop.f32.mrf.mxu2 }
 0x1e1   :  { %v519_v45 = vpop.eup %518  ;;  %v178_v46 = vadd.f32 %v456_v43, %v168_v44  ;;  %v487_v44 = vld [vmem:[%s868_s0 + $0xc0] sm:$0xff] }
 0x1e2   :  { %186 = vst.msk [vmem:[#allocation2 + $0x60] sm:$0xff] %vm32_vm0, %v519_v45 }
 0x1e3   :  { %520 = vtanh.f32 %v178_v46 }
 0x1e8   :  { %v171_v48 = vpop.f32.mrf.mxu2 }
 0x1e9   :  { %v521_v49 = vpop.eup %520  ;;  %v179_v50 = vadd.f32 %v457_v47, %v171_v48 }
 0x1ea   :  { %187 = vst.msk [vmem:[#allocation2 + $0x68] sm:$0xff] %vm32_vm0, %v521_v49 }
 0x1eb   :  { %522 = vtanh.f32 %v179_v50 }
 0x1f0   :  { %v174_v52 = vpop.f32.mrf.mxu2 }
 0x1f1   :  { %v523_v53 = vpop.eup %522  ;;  %v180_v54 = vadd.f32 %v458_v51, %v174_v52 }
 0x1f2   :  { %188 = vst.msk [vmem:[#allocation2 + $0x70] sm:$0xff] %vm32_vm0, %v523_v53 }
 0x1f3   :  { %524 = vtanh.f32 %v180_v54 }
 0x1f9   :  { %v525_v55 = vpop.eup %524 }
 0x1fa   :  { %189 = vst.msk [vmem:[#allocation2 + $0x78] sm:$0xff] %vm32_vm0, %v525_v55  ;;  %207 = vmatpush.msra.mxu3 %v525_v55 }
 0x1fc   :  { %208 = vmatpush.msra.mxu3 %v523_v53  ;;  %v490_v53 = vld [vmem:[%s868_s0 + $0xd8] sm:$0xff] }
 0x1fe   :  { %209 = vmatpush.msra.mxu3 %v521_v49  ;;  %v489_v49 = vld [vmem:[%s868_s0 + $0xd0] sm:$0xff] }
 0x200   :  { %210 = vmatpush.msra.mxu3 %v519_v45 }
 0x201   :  { %467 = vmatmul.msk.f32.vlgmr.msra.gmra.mxu3 %vm41_vm1, %v669_v4 }
 0x209   :  { %468 = vmatmul.msk.f32.gmra.mxu3 %vm41_vm1, %v676_v5 }
 0x211   :  { %469 = vmatmul.msk.f32.gmra.mxu3 %vm41_vm1, %v683_v6 }
 0x219   :  { %470 = vmatmul.msk.f32.gmra.mxu3 %vm41_vm1, %v690_v7 }
 0x284   :  { %v212_v57 = vpop.f32.mrf.mxu3 }
 0x285   :  { %v224_v58 = vadd.f32 %v463_v56, %v212_v57 }
 0x287   :  { %526 = vtanh.f32 %v224_v58  ;;  %v378_v58 = vld [vmem:[%s871_s3] sm:$0xff]  ;;  %s429_s3 = sshll.u32 %s874_s6, 4  ;;  %s430_s3 = int_to_ptr.hbm [resolvable:$true] %s429_s3 }
 0x28c   :  { %v215_v60 = vpop.f32.mrf.mxu3 }
 0x28d   :  { %v527_v61 = vpop.eup %526  ;;  %v225_v62 = vadd.f32 %v464_v59, %v215_v60 }
 0x28e   :  { %233 = vst.msk [vmem:[#allocation2 + $0x80] sm:$0xff] %vm32_vm0, %v527_v61 }
 0x28f   :  { %528 = vtanh.f32 %v225_v62 }
 0x294   :  { %v218_v0 = vpop.f32.mrf.mxu3 }
 0x295   :  { %v529_v1 = vpop.eup %528  ;;  %v226_v2 = vadd.f32 %v465_v63, %v218_v0 }
 0x296   :  { %234 = vst.msk [vmem:[#allocation2 + $0x88] sm:$0xff] %vm32_vm0, %v529_v1 }
 0x297   :  { %530 = vtanh.f32 %v226_v2 }
 0x29c   :  { %v221_v8 = vpop.f32.mrf.mxu3 }
 0x29d   :  { %v531_v9 = vpop.eup %530  ;;  %v227_v10 = vadd.f32 %v466_v3, %v221_v8 }
 0x29e   :  { %235 = vst.msk [vmem:[#allocation2 + $0x90] sm:$0xff] %vm32_vm0, %v531_v9 }
 0x29f   :  { %532 = vtanh.f32 %v227_v10 }
 0x2a5   :  { %v533_v11 = vpop.eup %532 }
 0x2a6   :  { %236 = vst.msk [vmem:[#allocation2 + $0x98] sm:$0xff] %vm32_vm0, %v533_v11  ;;  %254 = vmatpush.msrb.mxu0 %v533_v11 }
 0x2a8   :  { %255 = vmatpush.msrb.mxu0 %v531_v9 }
 0x2aa   :  { %256 = vmatpush.msrb.mxu0 %v529_v1 }
 0x2ac   :  { %257 = vmatpush.msrb.mxu0 %v527_v61 }
 0x2ad   :  { %475 = vmatmul.msk.f32.vlgmr.msrb.gmra.mxu0 %vm41_vm1, %v669_v4 }
 0x2b5   :  { %476 = vmatmul.msk.f32.gmra.mxu0 %vm41_vm1, %v676_v5 }
 0x2bd   :  { %477 = vmatmul.msk.f32.gmra.mxu0 %vm41_vm1, %v683_v6 }
 0x2c5   :  { %478 = vmatmul.msk.f32.gmra.mxu0 %vm41_vm1, %v690_v7 }
 0x32a   :  { %v259_v13 = vpop.f32.mrf.mxu0 }
 0x32b   :  { %v271_v14 = vadd.f32 %v471_v12, %v259_v13 }
 0x32d   :  { %534 = vtanh.f32 %v271_v14 }
 0x332   :  { %v262_v16 = vpop.f32.mrf.mxu0 }
 0x333   :  { %v535_v17 = vpop.eup %534  ;;  %v272_v18 = vadd.f32 %v472_v15, %v262_v16 }
 0x334   :  { %280 = vst.msk [vmem:[#allocation2 + $0xa0] sm:$0xff] %vm32_vm0, %v535_v17 }
 0x335   :  { %536 = vtanh.f32 %v272_v18 }
 0x33a   :  { %v265_v20 = vpop.f32.mrf.mxu0 }
 0x33b   :  { %v537_v21 = vpop.eup %536  ;;  %v273_v22 = vadd.f32 %v473_v19, %v265_v20 }
 0x33c   :  { %281 = vst.msk [vmem:[#allocation2 + $0xa8] sm:$0xff] %vm32_vm0, %v537_v21 }
 0x33d   :  { %538 = vtanh.f32 %v273_v22 }
 0x342   :  { %v268_v24 = vpop.f32.mrf.mxu0 }
 0x343   :  { %v539_v25 = vpop.eup %538  ;;  %v274_v26 = vadd.f32 %v474_v23, %v268_v24 }
 0x344   :  { %282 = vst.msk [vmem:[#allocation2 + $0xb0] sm:$0xff] %vm32_vm0, %v539_v25 }
 0x345   :  { %540 = vtanh.f32 %v274_v26 }
 0x34b   :  { %v541_v27 = vpop.eup %540 }
 0x34c   :  { %283 = vst.msk [vmem:[#allocation2 + $0xb8] sm:$0xff] %vm32_vm0, %v541_v27  ;;  %301 = vmatpush.msrb.mxu1 %v541_v27 }
 0x34e   :  { %302 = vmatpush.msrb.mxu1 %v539_v25 }
 0x350   :  { %303 = vmatpush.msrb.mxu1 %v537_v21 }
 0x352   :  { %304 = vmatpush.msrb.mxu1 %v535_v17 }
 0x353   :  { %483 = vmatmul.msk.f32.vlgmr.msrb.gmra.mxu1 %vm41_vm1, %v669_v4 }
 0x35b   :  { %484 = vmatmul.msk.f32.gmra.mxu1 %vm41_vm1, %v676_v5 }
 0x363   :  { %485 = vmatmul.msk.f32.gmra.mxu1 %vm41_vm1, %v683_v6 }
 0x36b   :  { %486 = vmatmul.msk.f32.gmra.mxu1 %vm41_vm1, %v690_v7 }
 0x3d0   :  { %v306_v29 = vpop.f32.mrf.mxu1 }
 0x3d1   :  { %v318_v30 = vadd.f32 %v479_v28, %v306_v29 }
 0x3d3   :  { %542 = vtanh.f32 %v318_v30 }
 0x3d8   :  { %v309_v32 = vpop.f32.mrf.mxu1 }
 0x3d9   :  { %v543_v33 = vpop.eup %542  ;;  %v319_v34 = vadd.f32 %v480_v31, %v309_v32 }
 0x3da   :  { %327 = vst.msk [vmem:[#allocation2 + $0xc0] sm:$0xff] %vm32_vm0, %v543_v33 }
 0x3db   :  { %544 = vtanh.f32 %v319_v34 }
 0x3e0   :  { %v312_v36 = vpop.f32.mrf.mxu1 }
 0x3e1   :  { %v545_v37 = vpop.eup %544  ;;  %v320_v38 = vadd.f32 %v481_v35, %v312_v36 }
 0x3e2   :  { %328 = vst.msk [vmem:[#allocation2 + $0xc8] sm:$0xff] %vm32_vm0, %v545_v37 }
 0x3e3   :  { %546 = vtanh.f32 %v320_v38 }
 0x3e8   :  { %v315_v40 = vpop.f32.mrf.mxu1 }
 0x3e9   :  { %v547_v41 = vpop.eup %546  ;;  %v321_v42 = vadd.f32 %v482_v39, %v315_v40 }
 0x3ea   :  { %329 = vst.msk [vmem:[#allocation2 + $0xd0] sm:$0xff] %vm32_vm0, %v547_v41 }
 0x3eb   :  { %548 = vtanh.f32 %v321_v42 }
 0x3f1   :  { %v549_v43 = vpop.eup %548 }
 0x3f2   :  { %330 = vst.msk [vmem:[#allocation2 + $0xd8] sm:$0xff] %vm32_vm0, %v549_v43  ;;  %348 = vmatpush.msrb.mxu2 %v549_v43 }
 0x3f4   :  { %349 = vmatpush.msrb.mxu2 %v547_v41 }
 0x3f6   :  { %350 = vmatpush.msrb.mxu2 %v545_v37 }
 0x3f8   :  { %351 = vmatpush.msrb.mxu2 %v543_v33 }
 0x3f9   :  { %491 = vmatmul.msk.f32.vlgmr.msrb.gmra.mxu2 %vm41_vm1, %v669_v4  ;;  %v488_v4 = vld [vmem:[%s868_s0 + $0xc8] sm:$0xff]  ;;  %s611_s0 = smov [#allocation2]  }
 0x3fa   :  { %s413_s18 = sshll.u32 %s611_s0, 4  ;;  %s414_s18 = int_to_ptr.vmem [resolvable:$true] %s413_s18 }
 0x401   :  { %492 = vmatmul.msk.f32.gmra.mxu2 %vm41_vm1, %v676_v5 }
 0x409   :  { %493 = vmatmul.msk.f32.gmra.mxu2 %vm41_vm1, %v683_v6  ;;  %v379_v6 = vld [vmem:[%s872_s4] sm:$0xff] }
 0x411   :  { %494 = vmatmul.msk.f32.gmra.mxu2 %vm41_vm1, %v690_v7  ;;  %v610_v7 = vmov 0  }
 0x412   :  { %501 = vset.pattern.permute.xlu0 %v610_v7 }
 0x413   :  { %382 = vperm.xlu0 %501, %v379_v6  }
 0x47c   :  { %v353_v45 = vpop.f32.mrf.mxu2 }
 0x47d   :  { %v365_v46 = vadd.f32 %v487_v44, %v353_v45 }
 0x47f   :  { %550 = vtanh.f32 %v365_v46 }
 0x484   :  { %v356_v47 = vpop.f32.mrf.mxu2 }
 0x485   :  { %v551_v48 = vpop.eup %550  ;;  %v366_v5 = vadd.f32 %v488_v4, %v356_v47  ;;  %v383_v59 = vpop.permute.xlu0 %382 }
 0x486   :  { %374 = vst.msk [vmem:[#allocation2 + $0xe0] sm:$0xff] %vm32_vm0, %v551_v48 }
 0x487   :  { %552 = vtanh.f32 %v366_v5 }
 0x48c   :  { %v359_v50 = vpop.f32.mrf.mxu2 }
 0x48d   :  { %v553_v51 = vpop.eup %552  ;;  %v367_v52 = vadd.f32 %v489_v49, %v359_v50 }
 0x48e   :  { %375 = vst.msk [vmem:[#allocation2 + $0xe8] sm:$0xff] %vm32_vm0, %v553_v51 }
 0x48f   :  { %554 = vtanh.f32 %v367_v52 }
 0x494   :  { %v362_v54 = vpop.f32.mrf.mxu2 }
 0x495   :  { %v555_v55 = vpop.eup %554  ;;  %v368_v56 = vadd.f32 %v490_v53, %v362_v54 }
 0x496   :  { %376 = vst.msk [vmem:[#allocation2 + $0xf0] sm:$0xff] %vm32_vm0, %v555_v55 }
 0x497   :  { %556 = vtanh.f32 %v368_v56 }
 0x49d   :  { %v557_v57 = vpop.eup %556 }
 0x49e   :  { %377 = vst.msk [vmem:[#allocation2 + $0xf8] sm:$0xff] %vm32_vm0, %v557_v57  ;;  %400 = vmatpush.msrb.mxu3 %v557_v57 }
 0x49f   :  { %421 = dma.vmem_to_hbm [thread:$0]  %s414_s18, 4096, %s416_s21, [#allocation3], %s612_s22, %s612_s22, %s613_s23  }
 0x4a0   :  { %401 = vmatpush.msrb.mxu3 %v555_v55 }
 0x4a2   :  { %402 = vmatpush.msrb.mxu3 %v553_v51 }
 0x4a4   :  { %403 = vmatpush.msrb.mxu3 %v551_v48 }
 0x4a5   :  { %495 = vmatmul.msk.f32.vlgmr.msrb.gmra.mxu3 %vm41_vm1, %v378_v58 }
 0x528   :  { %v405_v60 = vpop.f32.mrf.mxu3 }
 0x529   :  { %v406_v61 = vadd.f32 %v405_v60, %v383_v59 }
 0x52b   :  { %408 = vst.msk [vmem:[#allocation4] sm:$0xff] %vm32_vm0, %v406_v61 }
 0x52c   :  { %432 = dma.vmem_to_hbm [thread:$0]  %s428_s25, 128, %s430_s3, [#allocation5]  }
 0x52d   :  { %606 = dma.done.wait [#allocation3], 4096  }
 0x52e   :  { %607 = vsyncadd [#allocation3], 4294963200 }
 0x52f   :  { %608 = dma.done.wait [#allocation5], 128  }
 0x530   :  { %609 = vsyncadd [#allocation5], 4294967168 }
 0x531   :  { %441 = vsyncpa [#allocation3], 1 }
 0x532   :  { %442 = vsyncpa [#allocation5], 1 }

</bundles_post_ra>
